<compile_context>
chip_gen: v7x
topology: tpu7x:2x2x1
jax: 0.10.0
libtpu: 0.0.40
codegen_flags: <defaults>
</compile_context>

<pallas_src>
import functools

import jax
import jax.numpy as jnp
from jax import lax
from jax.experimental import pallas as pl
from jax.experimental.pallas import tpu as pltpu

# Model hyperparameters (globals implied by the PyTorch script, kept small).
N_EMBED = 32                      # n_embed
N_HEADS = 4                       # n_heads
HEAD_SIZE = N_EMBED // N_HEADS    # 8
FFWD_MULT = 4                     # ffwd_dim_mult
FFWD_DIM = FFWD_MULT * N_EMBED    # 128
BLOCK_SIZE = 8                    # sequence length T
BATCH = 2
DROPOUT = 0.0                     # TODO(synk): nn.Dropout skipped — eval-mode identity.
LN_EPS = 1e-5
NEG_BIG = -1e30                   # finite mask value (NaN-safe vs -inf)


def _gelu_tanh(x):
    # TODO(synk): PyTorch nn.GELU() defaults to the exact erf form; tanh
    # approximation used for guaranteed Mosaic lowering (~1e-3 deviation).
    c = 0.7978845608028654  # sqrt(2/pi)
    return 0.5 * x * (1.0 + jnp.tanh(c * (x + 0.044715 * x * x * x)))


def _ln_normalize(x):
    """LayerNorm without affine (gamma/beta folded into downstream weights)."""
    mu = jnp.mean(x, axis=-1, keepdims=True)
    xc = x - mu
    var = jnp.mean(xc * xc, axis=-1, keepdims=True)
    return xc * lax.rsqrt(var + LN_EPS)


def _transformer_block_kernel(x_ref, mask_ref, wqkv_ref, bqkv_ref,
                              wattn_ref, battn_ref, wm1_ref, bm1_ref,
                              wm2_ref, bm2_ref, out_ref, *, n_heads, head_size):
    BT, C = x_ref.shape
    x = x_ref[...]                                       # (B*T, C)
    mask_bias = mask_ref[...]                            # (B*T, B*T): 0 / -1e30

    # ---- attention branch: LN1 (affine + 1/sqrt(H) scale pre-folded) ----
    xn = _ln_normalize(x)
    qkv = jnp.dot(xn, wqkv_ref[...],
                  preferred_element_type=jnp.float32) + bqkv_ref[...]    # (B*T, 3C)

    w_attn = wattn_ref[...]        # (C, C) == blockdiag(per-head proj) @ Wo
    acc = jnp.zeros((BT, C), jnp.float32)
    for h in range(n_heads):       # static unroll, NH = 4
        lo = h * head_size
        hi = lo + head_size
        qh = qkv[:, lo:hi]                               # (B*T, H), pre-scaled
        kh = qkv[:, C + lo:C + hi]
        vh = qkv[:, 2 * C + lo:2 * C + hi]

        # q @ k^T without materializing a transpose; block-causal additive mask
        # masks both future positions and cross-batch rows.
        s = lax.dot_general(qh, kh, (((1,), (1,)), ((), ())),
                            preferred_element_type=jnp.float32) + mask_bias
        s = s - jnp.max(s, axis=-1, keepdims=True)
        e = jnp.exp(s)
        p = e * pl.reciprocal(jnp.sum(e, axis=-1, keepdims=True), approx=True)
        # TODO(synk): attention dropout skipped (eval-mode identity).
        oh = jnp.dot(p, vh, preferred_element_type=jnp.float32)          # (B*T, H)
        # Accumulate directly through the fused output projection: no VMEM
        # scratch, no masked sub-lane stores, no concat.
        acc = acc + jnp.dot(oh, w_attn[lo:hi, :],
                            preferred_element_type=jnp.float32)          # (B*T, C)

    x1 = x + acc + battn_ref[...]                        # residual 1

    # ---- MLP branch: LN2 (affine folded into wm1 / bm1) ----
    xn2 = _ln_normalize(x1)
    hdn = jnp.dot(xn2, wm1_ref[...], preferred_element_type=jnp.float32) + bm1_ref[...]
    hdn = _gelu_tanh(hdn)
    mlp = jnp.dot(hdn, wm2_ref[...], preferred_element_type=jnp.float32) + bm2_ref[...]
    # TODO(synk): MLP dropout skipped (eval-mode identity).

    out_ref[...] = x1 + mlp                              # residual 2


def transformer_block_forward(x, params):
    """Mirrors TransformerBlock.forward(x) -> x (eval mode)."""
    B, T, C = x.shape
    NH, _, HS = params["wq"].shape
    scale = float(HS) ** -0.5
    f32 = jnp.float32

    def heads_to_cols(w):  # (NH, C, HS) -> (C, NH*HS), head-major columns
        return jnp.transpose(w, (1, 0, 2)).reshape(C, NH * HS)

    # Fused QKV weight with the attention scale folded into the q columns.
    w_qkv = jnp.concatenate([heads_to_cols(params["wq"]) * scale,
                             heads_to_cols(params["wk"]),
                             heads_to_cols(params["wv"])], axis=1)          # (C, 3C)
    # Fold LN1 affine: ln1(x) @ W == xhat @ (g1[:,None] * W) + b1 @ W.
    b_qkv = params["ln1_b"][None, :] @ w_qkv                                # (1, 3C)
    w_qkv = params["ln1_g"][:, None] * w_qkv

    # Fold the per-head (block-diagonal) projection into the outer projection:
    #   W_attn[h*HS:(h+1)*HS, :] = Wp_h @ Wo[h*HS:(h+1)*HS, :]
    wo = params["wo"]
    w_attn = jnp.einsum('hij,hjk->hik', params["wp"],
                        wo.reshape(NH, HS, C)).reshape(C, C)                # (C, C)
    b_attn = params["bp"].reshape(1, C) @ wo + params["bo"][None, :]        # (1, C)

    # Fold LN2 affine into the first MLP layer.
    wm1 = params["wm1"]
    bm1_f = params["bm1"][None, :] + params["ln2_b"][None, :] @ wm1         # (1, F)
    wm1_f = params["ln2_g"][:, None] * wm1                                  # (C, F)

    # Block-causal additive mask over the fused (B*T) row axis: a query row may
    # only attend to earlier (or same) positions of the SAME batch element.
    ids = jnp.arange(B * T, dtype=jnp.int32)
    same_b = (ids[:, None] // T) == (ids[None, :] // T)
    causal = (ids[None, :] % T) <= (ids[:, None] % T)
    mask_bias = jnp.where(same_b & causal, 0.0, NEG_BIG).astype(f32)        # (B*T, B*T)

    args = (x.reshape(B * T, C).astype(f32), mask_bias,
            w_qkv.astype(f32), b_qkv.astype(f32),
            w_attn.astype(f32), b_attn.astype(f32),
            wm1_f.astype(f32), bm1_f.astype(f32),
            params["wm2"].astype(f32), params["bm2"].reshape(1, C).astype(f32))

    vmem = pl.BlockSpec(memory_space=pltpu.MemorySpace.VMEM)
    out2d = pl.pallas_call(
        functools.partial(_transformer_block_kernel, n_heads=NH, head_size=HS),
        out_shape=jax.ShapeDtypeStruct((B * T, C), f32),
        in_specs=[vmem] * len(args),
        out_specs=vmem,
    )(*args)
    return out2d.reshape(B, T, C)


def transformer_block_reference(x, params):
    """Pure-JAX reference mirroring the PyTorch module (eval mode, tanh GELU)."""
    def ln(z, g, b):
        mu = jnp.mean(z, axis=-1, keepdims=True)
        var = jnp.mean((z - mu) ** 2, axis=-1, keepdims=True)
        return (z - mu) * lax.rsqrt(var + LN_EPS) * g + b

    B, T, C = x.shape
    NH, _, HS = params["wq"].shape
    y = ln(x, params["ln1_g"], params["ln1_b"])
    tril = jnp.tril(jnp.ones((T, T), bool))
    head_outs = []
    for h in range(NH):
        q = y @ params["wq"][h]
        k = y @ params["wk"][h]
        v = y @ params["wv"][h]
        s = jnp.einsum('btd,bsd->bts', q, k) * HS ** -0.5
        s = jnp.where(tril, s, -jnp.inf)
        p = jax.nn.softmax(s, axis=-1)
        o = jnp.einsum('bts,bsd->btd', p, v)
        head_outs.append(o @ params["wp"][h] + params["bp"][h])
    sa = jnp.concatenate(head_outs, axis=-1) @ params["wo"] + params["bo"]
    x1 = x + sa
    y2 = ln(x1, params["ln2_g"], params["ln2_b"])
    hdn = _gelu_tanh(y2 @ params["wm1"] + params["bm1"])
    return x1 + hdn @ params["wm2"] + params["bm2"]


def init_params(key):
    """Deterministic init mirroring the PyTorch module's parameter shapes.

    PyTorch Linear weights are (out, in); stored here pre-transposed (in, out)
    so the kernel does x @ W directly.
    """
    ks = jax.random.split(key, 11)
    s_c = 1.0 / float(N_EMBED) ** 0.5
    s_h = 1.0 / float(HEAD_SIZE) ** 0.5
    s_f = 1.0 / float(FFWD_DIM) ** 0.5
    u = jax.random.uniform
    return {
        # per-head q/k/v projections (no bias)
        "wq": u(ks[0], (N_HEADS, N_EMBED, HEAD_SIZE), jnp.float32, -s_c, s_c),
        "wk": u(ks[1], (N_HEADS, N_EMBED, HEAD_SIZE), jnp.float32, -s_c, s_c),
        "wv": u(ks[2], (N_HEADS, N_EMBED, HEAD_SIZE), jnp.float32, -s_c, s_c),
        # per-head output projection (head_size -> head_size) with bias
        "wp": u(ks[3], (N_HEADS, HEAD_SIZE, HEAD_SIZE), jnp.float32, -s_h, s_h),
        "bp": u(ks[4], (N_HEADS, HEAD_SIZE), jnp.float32, -s_h, s_h),
        # MultiHeadAttention outer projection (n_embed -> n_embed)
        "wo": u(ks[5], (N_EMBED, N_EMBED), jnp.float32, -s_c, s_c),
        "bo": u(ks[6], (N_EMBED,), jnp.float32, -s_c, s_c),
        # layer norms
        "ln1_g": jnp.ones((N_EMBED,), jnp.float32),
        "ln1_b": jnp.zeros((N_EMBED,), jnp.float32),
        "ln2_g": jnp.ones((N_EMBED,), jnp.float32),
        "ln2_b": jnp.zeros((N_EMBED,), jnp.float32),
        # MLP
        "wm1": u(ks[7], (N_EMBED, FFWD_DIM), jnp.float32, -s_c, s_c),
        "bm1": u(ks[8], (FFWD_DIM,), jnp.float32, -s_c, s_c),
        "wm2": u(ks[9], (FFWD_DIM, N_EMBED), jnp.float32, -s_f, s_f),
        "bm2": u(ks[10], (N_EMBED,), jnp.float32, -s_f, s_f),
    }


if __name__ == "__main__":
    key = jax.random.PRNGKey(0)
    pkey, xkey = jax.random.split(key)
    params = init_params(pkey)

    x = jax.random.normal(xkey, (BATCH, BLOCK_SIZE, N_EMBED), jnp.float32)

    out = transformer_block_forward(x, params)
    jax.block_until_ready(out)
    assert out.shape == (BATCH, BLOCK_SIZE, N_EMBED)

    # Loose-tolerance check vs. a pure-JAX reference (approx reciprocal and
    # algebraic weight folds cause small, benign deviations).
    ref = transformer_block_reference(x, params)
    max_err = float(jnp.max(jnp.abs(out - ref)))
    assert jnp.allclose(out, ref, atol=1e-2, rtol=1e-2), max_err

    print("KERNEL_OK")
</pallas_src>

<mosaic_0001>
module attributes {stable_mosaic.version = 11 : i64} {
  func.func @_transformer_block_kernel(%arg0: memref<16x32xf32, #tpu.memory_space<vmem>>, %arg1: memref<16x16xf32, #tpu.memory_space<vmem>>, %arg2: memref<32x96xf32, #tpu.memory_space<vmem>>, %arg3: memref<1x96xf32, #tpu.memory_space<vmem>>, %arg4: memref<32x32xf32, #tpu.memory_space<vmem>>, %arg5: memref<1x32xf32, #tpu.memory_space<vmem>>, %arg6: memref<32x128xf32, #tpu.memory_space<vmem>>, %arg7: memref<1x128xf32, #tpu.memory_space<vmem>>, %arg8: memref<128x32xf32, #tpu.memory_space<vmem>>, %arg9: memref<1x32xf32, #tpu.memory_space<vmem>>, %arg10: memref<16x32xf32, #tpu.memory_space<vmem>>) attributes {dimension_semantics = [], scalar_prefetch = 0 : i64, scratch_operands = 0 : i64, tpu.core_type = #tpu.core_type<tc>} {
    %c0 = arith.constant 0 : index
    %c0_0 = arith.constant 0 : index
    %0 = vector.load %arg0[%c0, %c0_0] : memref<16x32xf32, #tpu.memory_space<vmem>>, vector<16x32xf32>
    %c0_1 = arith.constant 0 : index
    %c0_2 = arith.constant 0 : index
    %1 = vector.load %arg1[%c0_1, %c0_2] : memref<16x16xf32, #tpu.memory_space<vmem>>, vector<16x16xf32>
    %cst = arith.constant dense<0.000000e+00> : vector<16xf32>
    %2 = vector.multi_reduction <add>, %0, %cst [1] : vector<16x32xf32> to vector<16xf32>
    %3 = vector.shape_cast %2 : vector<16xf32> to vector<16x1xf32>
    %cst_3 = arith.constant 3.200000e+01 : f32
    %4 = vector.broadcast %cst_3 : f32 to vector<16x1xf32>
    %5 = arith.divf %3, %4 : vector<16x1xf32>
    %6 = vector.broadcast %5 : vector<16x1xf32> to vector<16x32xf32>
    %7 = arith.subf %0, %6 : vector<16x32xf32>
    %8 = arith.mulf %7, %7 : vector<16x32xf32>
    %cst_4 = arith.constant dense<0.000000e+00> : vector<16xf32>
    %9 = vector.multi_reduction <add>, %8, %cst_4 [1] : vector<16x32xf32> to vector<16xf32>
    %10 = vector.shape_cast %9 : vector<16xf32> to vector<16x1xf32>
    %cst_5 = arith.constant 3.200000e+01 : f32
    %11 = vector.broadcast %cst_5 : f32 to vector<16x1xf32>
    %12 = arith.divf %10, %11 : vector<16x1xf32>
    %cst_6 = arith.constant 9.99999974E-6 : f32
    %13 = vector.broadcast %cst_6 : f32 to vector<16x1xf32>
    %14 = arith.addf %12, %13 : vector<16x1xf32>
    %15 = math.rsqrt %14 : vector<16x1xf32>
    %16 = vector.broadcast %15 : vector<16x1xf32> to vector<16x32xf32>
    %17 = arith.mulf %7, %16 : vector<16x32xf32>
    %c0_7 = arith.constant 0 : index
    %c0_8 = arith.constant 0 : index
    %18 = vector.load %arg2[%c0_7, %c0_8] : memref<32x96xf32, #tpu.memory_space<vmem>>, vector<32x96xf32>
    %cst_9 = arith.constant dense<0.000000e+00> : vector<16x96xf32>
    %19 = tpu.matmul %17, %18, %cst_9 {dimension_numbers = #tpu.dot_dimension_numbers<[1], [0], [0], [1], [0, 0, 1, 1], [], []>} : vector<16x32xf32>, vector<32x96xf32>, vector<16x96xf32> -> vector<16x96xf32>
    %c0_10 = arith.constant 0 : index
    %c0_11 = arith.constant 0 : index
    %20 = vector.load %arg3[%c0_10, %c0_11] : memref<1x96xf32, #tpu.memory_space<vmem>>, vector<1x96xf32>
    %21 = vector.broadcast %20 : vector<1x96xf32> to vector<16x96xf32>
    %22 = arith.addf %19, %21 : vector<16x96xf32>
    %c0_12 = arith.constant 0 : index
    %c0_13 = arith.constant 0 : index
    %23 = vector.load %arg4[%c0_12, %c0_13] : memref<32x32xf32, #tpu.memory_space<vmem>>, vector<32x32xf32>
    %cst_14 = arith.constant 0.000000e+00 : f32
    %24 = vector.broadcast %cst_14 : f32 to vector<16x32xf32>
    %25 = vector.extract_strided_slice %22 {offsets = [0, 0], sizes = [16, 8], strides = [1, 1]} : vector<16x96xf32> to vector<16x8xf32>
    %26 = vector.extract_strided_slice %22 {offsets = [0, 32], sizes = [16, 8], strides = [1, 1]} : vector<16x96xf32> to vector<16x8xf32>
    %27 = vector.extract_strided_slice %22 {offsets = [0, 64], sizes = [16, 8], strides = [1, 1]} : vector<16x96xf32> to vector<16x8xf32>
    %cst_15 = arith.constant dense<0.000000e+00> : vector<16x16xf32>
    %28 = tpu.matmul %25, %26, %cst_15 {dimension_numbers = #tpu.dot_dimension_numbers<[1], [1], [0], [0], [0, 0, 1, 0], [], []>} : vector<16x8xf32>, vector<16x8xf32>, vector<16x16xf32> -> vector<16x16xf32>
    %29 = arith.addf %28, %1 : vector<16x16xf32>
    %cst_16 = arith.constant dense<0xFF800000> : vector<16xf32>
    %30 = vector.multi_reduction <maximumf>, %29, %cst_16 [1] : vector<16x16xf32> to vector<16xf32>
    %31 = vector.shape_cast %30 : vector<16xf32> to vector<16x1xf32>
    %32 = vector.broadcast %31 : vector<16x1xf32> to vector<16x16xf32>
    %33 = arith.subf %29, %32 : vector<16x16xf32>
    %34 = math.exp %33 : vector<16x16xf32>
    %cst_17 = arith.constant dense<0.000000e+00> : vector<16xf32>
    %35 = vector.multi_reduction <add>, %34, %cst_17 [1] : vector<16x16xf32> to vector<16xf32>
    %36 = vector.shape_cast %35 : vector<16xf32> to vector<16x1xf32>
    %37 = tpu.reciprocal %36 {approx = true} : vector<16x1xf32> -> vector<16x1xf32>
    %38 = vector.broadcast %37 : vector<16x1xf32> to vector<16x16xf32>
    %39 = arith.mulf %34, %38 : vector<16x16xf32>
    %cst_18 = arith.constant dense<0.000000e+00> : vector<16x8xf32>
    %40 = tpu.matmul %39, %27, %cst_18 {dimension_numbers = #tpu.dot_dimension_numbers<[1], [0], [0], [1], [0, 0, 1, 1], [], []>} : vector<16x16xf32>, vector<16x8xf32>, vector<16x8xf32> -> vector<16x8xf32>
    %41 = vector.extract_strided_slice %23 {offsets = [0, 0], sizes = [8, 32], strides = [1, 1]} : vector<32x32xf32> to vector<8x32xf32>
    %cst_19 = arith.constant dense<0.000000e+00> : vector<16x32xf32>
    %42 = tpu.matmul %40, %41, %cst_19 {dimension_numbers = #tpu.dot_dimension_numbers<[1], [0], [0], [1], [0, 0, 1, 1], [], []>} : vector<16x8xf32>, vector<8x32xf32>, vector<16x32xf32> -> vector<16x32xf32>
    %43 = arith.addf %24, %42 : vector<16x32xf32>
    %44 = vector.extract_strided_slice %22 {offsets = [0, 8], sizes = [16, 8], strides = [1, 1]} : vector<16x96xf32> to vector<16x8xf32>
    %45 = vector.extract_strided_slice %22 {offsets = [0, 40], sizes = [16, 8], strides = [1, 1]} : vector<16x96xf32> to vector<16x8xf32>
    %46 = vector.extract_strided_slice %22 {offsets = [0, 72], sizes = [16, 8], strides = [1, 1]} : vector<16x96xf32> to vector<16x8xf32>
    %cst_20 = arith.constant dense<0.000000e+00> : vector<16x16xf32>
    %47 = tpu.matmul %44, %45, %cst_20 {dimension_numbers = #tpu.dot_dimension_numbers<[1], [1], [0], [0], [0, 0, 1, 0], [], []>} : vector<16x8xf32>, vector<16x8xf32>, vector<16x16xf32> -> vector<16x16xf32>
    %48 = arith.addf %47, %1 : vector<16x16xf32>
    %cst_21 = arith.constant dense<0xFF800000> : vector<16xf32>
    %49 = vector.multi_reduction <maximumf>, %48, %cst_21 [1] : vector<16x16xf32> to vector<16xf32>
    %50 = vector.shape_cast %49 : vector<16xf32> to vector<16x1xf32>
    %51 = vector.broadcast %50 : vector<16x1xf32> to vector<16x16xf32>
    %52 = arith.subf %48, %51 : vector<16x16xf32>
    %53 = math.exp %52 : vector<16x16xf32>
    %cst_22 = arith.constant dense<0.000000e+00> : vector<16xf32>
    %54 = vector.multi_reduction <add>, %53, %cst_22 [1] : vector<16x16xf32> to vector<16xf32>
    %55 = vector.shape_cast %54 : vector<16xf32> to vector<16x1xf32>
    %56 = tpu.reciprocal %55 {approx = true} : vector<16x1xf32> -> vector<16x1xf32>
    %57 = vector.broadcast %56 : vector<16x1xf32> to vector<16x16xf32>
    %58 = arith.mulf %53, %57 : vector<16x16xf32>
    %cst_23 = arith.constant dense<0.000000e+00> : vector<16x8xf32>
    %59 = tpu.matmul %58, %46, %cst_23 {dimension_numbers = #tpu.dot_dimension_numbers<[1], [0], [0], [1], [0, 0, 1, 1], [], []>} : vector<16x16xf32>, vector<16x8xf32>, vector<16x8xf32> -> vector<16x8xf32>
    %60 = vector.extract_strided_slice %23 {offsets = [8, 0], sizes = [8, 32], strides = [1, 1]} : vector<32x32xf32> to vector<8x32xf32>
    %cst_24 = arith.constant dense<0.000000e+00> : vector<16x32xf32>
    %61 = tpu.matmul %59, %60, %cst_24 {dimension_numbers = #tpu.dot_dimension_numbers<[1], [0], [0], [1], [0, 0, 1, 1], [], []>} : vector<16x8xf32>, vector<8x32xf32>, vector<16x32xf32> -> vector<16x32xf32>
    %62 = arith.addf %43, %61 : vector<16x32xf32>
    %63 = vector.extract_strided_slice %22 {offsets = [0, 16], sizes = [16, 8], strides = [1, 1]} : vector<16x96xf32> to vector<16x8xf32>
    %64 = vector.extract_strided_slice %22 {offsets = [0, 48], sizes = [16, 8], strides = [1, 1]} : vector<16x96xf32> to vector<16x8xf32>
    %65 = vector.extract_strided_slice %22 {offsets = [0, 80], sizes = [16, 8], strides = [1, 1]} : vector<16x96xf32> to vector<16x8xf32>
    %cst_25 = arith.constant dense<0.000000e+00> : vector<16x16xf32>
    %66 = tpu.matmul %63, %64, %cst_25 {dimension_numbers = #tpu.dot_dimension_numbers<[1], [1], [0], [0], [0, 0, 1, 0], [], []>} : vector<16x8xf32>, vector<16x8xf32>, vector<16x16xf32> -> vector<16x16xf32>
    %67 = arith.addf %66, %1 : vector<16x16xf32>
    %cst_26 = arith.constant dense<0xFF800000> : vector<16xf32>
    %68 = vector.multi_reduction <maximumf>, %67, %cst_26 [1] : vector<16x16xf32> to vector<16xf32>
    %69 = vector.shape_cast %68 : vector<16xf32> to vector<16x1xf32>
    %70 = vector.broadcast %69 : vector<16x1xf32> to vector<16x16xf32>
    %71 = arith.subf %67, %70 : vector<16x16xf32>
    %72 = math.exp %71 : vector<16x16xf32>
    %cst_27 = arith.constant dense<0.000000e+00> : vector<16xf32>
    %73 = vector.multi_reduction <add>, %72, %cst_27 [1] : vector<16x16xf32> to vector<16xf32>
    %74 = vector.shape_cast %73 : vector<16xf32> to vector<16x1xf32>
    %75 = tpu.reciprocal %74 {approx = true} : vector<16x1xf32> -> vector<16x1xf32>
    %76 = vector.broadcast %75 : vector<16x1xf32> to vector<16x16xf32>
    %77 = arith.mulf %72, %76 : vector<16x16xf32>
    %cst_28 = arith.constant dense<0.000000e+00> : vector<16x8xf32>
    %78 = tpu.matmul %77, %65, %cst_28 {dimension_numbers = #tpu.dot_dimension_numbers<[1], [0], [0], [1], [0, 0, 1, 1], [], []>} : vector<16x16xf32>, vector<16x8xf32>, vector<16x8xf32> -> vector<16x8xf32>
    %79 = vector.extract_strided_slice %23 {offsets = [16, 0], sizes = [8, 32], strides = [1, 1]} : vector<32x32xf32> to vector<8x32xf32>
    %cst_29 = arith.constant dense<0.000000e+00> : vector<16x32xf32>
    %80 = tpu.matmul %78, %79, %cst_29 {dimension_numbers = #tpu.dot_dimension_numbers<[1], [0], [0], [1], [0, 0, 1, 1], [], []>} : vector<16x8xf32>, vector<8x32xf32>, vector<16x32xf32> -> vector<16x32xf32>
    %81 = arith.addf %62, %80 : vector<16x32xf32>
    %82 = vector.extract_strided_slice %22 {offsets = [0, 24], sizes = [16, 8], strides = [1, 1]} : vector<16x96xf32> to vector<16x8xf32>
    %83 = vector.extract_strided_slice %22 {offsets = [0, 56], sizes = [16, 8], strides = [1, 1]} : vector<16x96xf32> to vector<16x8xf32>
    %84 = vector.extract_strided_slice %22 {offsets = [0, 88], sizes = [16, 8], strides = [1, 1]} : vector<16x96xf32> to vector<16x8xf32>
    %cst_30 = arith.constant dense<0.000000e+00> : vector<16x16xf32>
    %85 = tpu.matmul %82, %83, %cst_30 {dimension_numbers = #tpu.dot_dimension_numbers<[1], [1], [0], [0], [0, 0, 1, 0], [], []>} : vector<16x8xf32>, vector<16x8xf32>, vector<16x16xf32> -> vector<16x16xf32>
    %86 = arith.addf %85, %1 : vector<16x16xf32>
    %cst_31 = arith.constant dense<0xFF800000> : vector<16xf32>
    %87 = vector.multi_reduction <maximumf>, %86, %cst_31 [1] : vector<16x16xf32> to vector<16xf32>
    %88 = vector.shape_cast %87 : vector<16xf32> to vector<16x1xf32>
    %89 = vector.broadcast %88 : vector<16x1xf32> to vector<16x16xf32>
    %90 = arith.subf %86, %89 : vector<16x16xf32>
    %91 = math.exp %90 : vector<16x16xf32>
    %cst_32 = arith.constant dense<0.000000e+00> : vector<16xf32>
    %92 = vector.multi_reduction <add>, %91, %cst_32 [1] : vector<16x16xf32> to vector<16xf32>
    %93 = vector.shape_cast %92 : vector<16xf32> to vector<16x1xf32>
    %94 = tpu.reciprocal %93 {approx = true} : vector<16x1xf32> -> vector<16x1xf32>
    %95 = vector.broadcast %94 : vector<16x1xf32> to vector<16x16xf32>
    %96 = arith.mulf %91, %95 : vector<16x16xf32>
    %cst_33 = arith.constant dense<0.000000e+00> : vector<16x8xf32>
    %97 = tpu.matmul %96, %84, %cst_33 {dimension_numbers = #tpu.dot_dimension_numbers<[1], [0], [0], [1], [0, 0, 1, 1], [], []>} : vector<16x16xf32>, vector<16x8xf32>, vector<16x8xf32> -> vector<16x8xf32>
    %98 = vector.extract_strided_slice %23 {offsets = [24, 0], sizes = [8, 32], strides = [1, 1]} : vector<32x32xf32> to vector<8x32xf32>
    %cst_34 = arith.constant dense<0.000000e+00> : vector<16x32xf32>
    %99 = tpu.matmul %97, %98, %cst_34 {dimension_numbers = #tpu.dot_dimension_numbers<[1], [0], [0], [1], [0, 0, 1, 1], [], []>} : vector<16x8xf32>, vector<8x32xf32>, vector<16x32xf32> -> vector<16x32xf32>
    %100 = arith.addf %81, %99 : vector<16x32xf32>
    %101 = arith.addf %0, %100 : vector<16x32xf32>
    %c0_35 = arith.constant 0 : index
    %c0_36 = arith.constant 0 : index
    %102 = vector.load %arg5[%c0_35, %c0_36] : memref<1x32xf32, #tpu.memory_space<vmem>>, vector<1x32xf32>
    %103 = vector.broadcast %102 : vector<1x32xf32> to vector<16x32xf32>
    %104 = arith.addf %101, %103 : vector<16x32xf32>
    %cst_37 = arith.constant dense<0.000000e+00> : vector<16xf32>
    %105 = vector.multi_reduction <add>, %104, %cst_37 [1] : vector<16x32xf32> to vector<16xf32>
    %106 = vector.shape_cast %105 : vector<16xf32> to vector<16x1xf32>
    %cst_38 = arith.constant 3.200000e+01 : f32
    %107 = vector.broadcast %cst_38 : f32 to vector<16x1xf32>
    %108 = arith.divf %106, %107 : vector<16x1xf32>
    %109 = vector.broadcast %108 : vector<16x1xf32> to vector<16x32xf32>
    %110 = arith.subf %104, %109 : vector<16x32xf32>
    %111 = arith.mulf %110, %110 : vector<16x32xf32>
    %cst_39 = arith.constant dense<0.000000e+00> : vector<16xf32>
    %112 = vector.multi_reduction <add>, %111, %cst_39 [1] : vector<16x32xf32> to vector<16xf32>
    %113 = vector.shape_cast %112 : vector<16xf32> to vector<16x1xf32>
    %cst_40 = arith.constant 3.200000e+01 : f32
    %114 = vector.broadcast %cst_40 : f32 to vector<16x1xf32>
    %115 = arith.divf %113, %114 : vector<16x1xf32>
    %cst_41 = arith.constant 9.99999974E-6 : f32
    %116 = vector.broadcast %cst_41 : f32 to vector<16x1xf32>
    %117 = arith.addf %115, %116 : vector<16x1xf32>
    %118 = math.rsqrt %117 : vector<16x1xf32>
    %119 = vector.broadcast %118 : vector<16x1xf32> to vector<16x32xf32>
    %120 = arith.mulf %110, %119 : vector<16x32xf32>
    %c0_42 = arith.constant 0 : index
    %c0_43 = arith.constant 0 : index
    %121 = vector.load %arg6[%c0_42, %c0_43] : memref<32x128xf32, #tpu.memory_space<vmem>>, vector<32x128xf32>
    %cst_44 = arith.constant dense<0.000000e+00> : vector<16x128xf32>
    %122 = tpu.matmul %120, %121, %cst_44 {dimension_numbers = #tpu.dot_dimension_numbers<[1], [0], [0], [1], [0, 0, 1, 1], [], []>} : vector<16x32xf32>, vector<32x128xf32>, vector<16x128xf32> -> vector<16x128xf32>
    %c0_45 = arith.constant 0 : index
    %c0_46 = arith.constant 0 : index
    %123 = vector.load %arg7[%c0_45, %c0_46] : memref<1x128xf32, #tpu.memory_space<vmem>>, vector<1x128xf32>
    %124 = vector.broadcast %123 : vector<1x128xf32> to vector<16x128xf32>
    %125 = arith.addf %122, %124 : vector<16x128xf32>
    %cst_47 = arith.constant 5.000000e-01 : f32
    %126 = vector.broadcast %cst_47 : f32 to vector<16x128xf32>
    %127 = arith.mulf %126, %125 : vector<16x128xf32>
    %cst_48 = arith.constant 4.471500e-02 : f32
    %128 = vector.broadcast %cst_48 : f32 to vector<16x128xf32>
    %129 = arith.mulf %128, %125 : vector<16x128xf32>
    %130 = arith.mulf %129, %125 : vector<16x128xf32>
    %131 = arith.mulf %130, %125 : vector<16x128xf32>
    %132 = arith.addf %125, %131 : vector<16x128xf32>
    %cst_49 = arith.constant 0.797884583 : f32
    %133 = vector.broadcast %cst_49 : f32 to vector<16x128xf32>
    %134 = arith.mulf %133, %132 : vector<16x128xf32>
    %135 = math.tanh %134 : vector<16x128xf32>
    %cst_50 = arith.constant 1.000000e+00 : f32
    %136 = vector.broadcast %cst_50 : f32 to vector<16x128xf32>
    %137 = arith.addf %136, %135 : vector<16x128xf32>
    %138 = arith.mulf %127, %137 : vector<16x128xf32>
    %c0_51 = arith.constant 0 : index
    %c0_52 = arith.constant 0 : index
    %139 = vector.load %arg8[%c0_51, %c0_52] : memref<128x32xf32, #tpu.memory_space<vmem>>, vector<128x32xf32>
    %cst_53 = arith.constant dense<0.000000e+00> : vector<16x32xf32>
    %140 = tpu.matmul %138, %139, %cst_53 {dimension_numbers = #tpu.dot_dimension_numbers<[1], [0], [0], [1], [0, 0, 1, 1], [], []>} : vector<16x128xf32>, vector<128x32xf32>, vector<16x32xf32> -> vector<16x32xf32>
    %c0_54 = arith.constant 0 : index
    %c0_55 = arith.constant 0 : index
    %141 = vector.load %arg9[%c0_54, %c0_55] : memref<1x32xf32, #tpu.memory_space<vmem>>, vector<1x32xf32>
    %142 = vector.broadcast %141 : vector<1x32xf32> to vector<16x32xf32>
    %143 = arith.addf %140, %142 : vector<16x32xf32>
    %144 = arith.addf %104, %143 : vector<16x32xf32>
    %c0_56 = arith.constant 0 : index
    %c0_57 = arith.constant 0 : index
    %145 = vector.load %arg10[%c0_56, %c0_57] : memref<16x32xf32, #tpu.memory_space<vmem>>, vector<16x32xf32>
    tpu.vector_store %arg10[%c0_56, %c0_57], %144 {strides = array<i32>} : memref<16x32xf32, #tpu.memory_space<vmem>>, vector<16x32xf32>,
    return
  }
}

</mosaic_0001>

<bundles_post_ra>
// kernel: tpu_custom_call.1
= control target key start
LH: loop header
LB: loop body
LE: loop exit
PB: predicated region body
PF: predicated region fallthrough
CT: control target
= control target key end

     0   :  { %vm40_vm0 = vcmask 261120   ;;  %s2347_s0 = inlined_call_operand.vmem [shape: f32[16,32], index: 0, kind: input, shape index: {}]   ;;  %s2348_s1 = inlined_call_operand.vmem [shape: f32[16,16], index: 1, kind: input, shape index: {}]   ;;  %s2349_s2 = inlined_call_operand.vmem [shape: f32[32,96], index: 2, kind: input, shape index: {}]   ;;  %s2350_s3 = inlined_call_operand.vmem [shape: f32[1,96], index: 3, kind: input, shape index: {}]   ;;  %s2351_s4 = inlined_call_operand.vmem [shape: f32[32,32], index: 4, kind: input, shape index: {}]   ;;  %s2352_s5 = inlined_call_operand.vmem [shape: f32[1,32], index: 5, kind: input, shape index: {}]   ;;  %s2353_s6 = inlined_call_operand.vmem [shape: f32[32,128], index: 6, kind: input, shape index: {}]   ;;  %s2354_s7 = inlined_call_operand.vmem [shape: f32[1,128], index: 7, kind: input, shape index: {}]   ;;  %s2355_s8 = inlined_call_operand.vmem [shape: f32[128,32], index: 8, kind: input, shape index: {}]   ;;  %s2356_s9 = inlined_call_operand.vmem [shape: f32[1,32], index: 9, kind: input, shape index: {}]   ;;  %s2357_s10 = inlined_call_operand.hbm [shape: f32[16,32], index: 10, kind: output, shape index: {}]  }
   0x1   :  { %v2092_v0 = vld [vmem:[%s2347_s0] sm:$0xff]  ;;  %v2097_v1 = vld [vmem:[%s2347_s0 + $0x8] sm:$0xff] }
   0x2   :  { %15 = vsyncpa [#allocation3], 0  ;;  %v41_v2 = vsel %vm40_vm0, %v2092_v0, 0.0  ;;  %v44_v3 = vsel %vm40_vm0, %v2097_v1, 0.0  ;;  %v68_v14 = vld [vmem:[%s2349_s2] sm:$0xff]  ;;  %v69_v15 = vld [vmem:[%s2349_s2 + $0x8] sm:$0xff] }
   0x3   :  { %42 = vadd.xlane.f32.xlu0 %v41_v2  ;;  %v70_v16 = vld [vmem:[%s2349_s2 + $0x10] sm:$0xff]  ;;  %v1804_v17 = vpack.c.bf16 %v69_v15, %v68_v14  ;;  %v71_v18 = vld [vmem:[%s2349_s2 + $0x18] sm:$0xff]  ;;  %v1557_v30 = vld [vmem:[%s2350_s3] ss:$0 sm:$0xff]  ;;  %vm170_vm1 = vcmask 64512   ;;  %s2020_s25 = smov 96  }
   0x4   :  { %v1808_v19 = vpack.c.bf16 %v71_v18, %v70_v16  ;;  %s2021_s26 = smov 88   ;;  %s2022_s3 = smov 120   ;;  %vm2140_vm2 = vmpackc.low %vm170_vm1, %vm170_vm1  ;;  %v2153_v41 = vld [vmem:[%s2348_s1] sm:$0xff]  ;;  %v2158_v43 = vld [vmem:[%s2348_s1 + $0x8] sm:$0xff]  ;;  %vm254_vm3 = vcmask 130048  }
   0x5   :  { %1805 = vmatprep.subr.bf16.mxu1 %v1804_v17  ;;  %s2023_s1 = smov 64   ;;  %s2024_s11 = smov 56  }
   0x6   :  { %1807 = vmatpush3.bf16.msra.mxu1 %v1804_v17  ;;  %s2025_s12 = smov 112   ;;  %s2026_s13 = smov 72  }
   0x7   :  { %45 = vadd.xlane.f32.xlu0 %v44_v3  ;;  %1809 = vmatprep.subr.bf16.mxu1 %v1808_v19  ;;  %s2027_s14 = smov 104   ;;  %s2028_s15 = smov 80  }
   0x8   :  { %s2029_s19 = smov 48   ;;  %s2030_s20 = smov 40  }
   0x9   :  { %s2031_s16 = smov [#allocation2]  }
   0xa   :  { %1811 = vmatpush3.bf16.msra.mxu1 %v1808_v19  ;;  %s1546_s0 = sshll.u32 %s2031_s16, 4  ;;  %s1547_s0 = int_to_ptr.vmem [resolvable:$true] %s1546_s0 }
   0xb   :  { %s1996_s17 = scalar_lea.vmem %s1547_s0, 256  ;;  %p2001_p1 = scmp.lt.s32.totalorder %s1547_s0, %s1547_s0 }
   0xc   :  { %p1997_p0 = scmp.ne.s32.totalorder %s1547_s0, %s1996_s17  ;;  %p2002_p2 = scmp.lt.s32.totalorder %s1996_s17, %s1996_s17 }
   0xe   :  { %p2003_p3 = por %p2002_p2, %p2001_p1 }
  0x10   :  { %p2004_p4 = pnand %p2003_p3, %p1997_p0 }
  0x90   :  { %v43_v4 = vpop.xlane.xlu0 %42 }
  0x91   :  { %v48_v5 = vmul.f32 0.03125, %v43_v4 }
  0x93   :  { %v50_v6 = vsub.f32 %v2092_v0, %v48_v5 }
  0x94   :  { %v46_v7 = vpop.xlane.xlu0 %45 }
  0x95   :  { %v49_v8 = vmul.f32 0.03125, %v46_v7  ;;  %v52_v9 = vmul.f32 %v50_v6, %v50_v6 }
  0x97   :  { %v51_v10 = vsub.f32 %v2097_v1, %v49_v8  ;;  %v54_v11 = vsel %vm40_vm0, %v52_v9, 0.0 }
  0x98   :  { %55 = vadd.xlane.f32.xlu1 %v54_v11 }
  0x99   :  { %v53_v12 = vmul.f32 %v51_v10, %v51_v10 }
  0x9b   :  { %v57_v13 = vsel %vm40_vm0, %v53_v12, 0.0 }
  0x9c   :  { %58 = vadd.xlane.f32.xlu1 %v57_v13 }
 0x125   :  { %v56_v20 = vpop.xlane.xlu1 %55 }
 0x126   :  { %v60_v21 = vmul.f32 0.03125, %v56_v20 }
 0x128   :  { %v62_v22 = vadd.f32 1e-05, %v60_v21 }
 0x129   :  { %v59_v23 = vpop.xlane.xlu1 %58 }
 0x12a   :  { %1952 = vrsqrt.f32 %v62_v22  ;;  %v61_v24 = vmul.f32 0.03125, %v59_v23 }
 0x12c   :  { %v63_v25 = vadd.f32 1e-05, %v61_v24 }
 0x12e   :  { %1954 = vrsqrt.f32 %v63_v25 }
 0x134   :  { %v1953_v26 = vpop.eup %1952 }
 0x135   :  { %v66_v27 = vmul.f32 %v1953_v26, %v50_v6 }
 0x137   :  { %1679 = vmatprep.mubr.msk.f32.mxu1 %vm40_vm0, %v66_v27 }
 0x138   :  { %v1955_v28 = vpop.eup %1954 }
 0x139   :  { %v67_v29 = vmul.f32 %v1955_v28, %v51_v10 }
 0x13b   :  { %1680 = vmatmul.mubr.msk.f32.vlgmr.msra.gmra.mrb[0].mxu1 %vm40_vm0, %v67_v29 }
 0x20e   :  { %v1681_v31 = vpop.f32.mrb[0].mxu1 }
 0x20f   :  { %v2124_v32 = vadd.f32 %v1681_v31, %v1557_v30  ;;  %v151_v33 = vpop.f32.mrb[1].mxu1 }
 0x210   :  { %v2126_v34 = vadd.f32 %v1557_v30, %v151_v33 }
 0x212   :  { %1686 = vmatprep.mubr.msk.f32.mxu1 %vm170_vm1, %v2126_v34  ;;  %v2132_v35 = vpack.i.bf16 %v2124_v32, %v2126_v34 }
 0x214   :  { %1913 = vrot.lane.b32.xlu0 %v2132_v35, %s2020_s25 }
 0x218   :  { %1923 = vrot.lane.b32.xlu0 %v2132_v35, %s2021_s26 }
 0x21c   :  { %364 = vrot.lane.b32.xlu0 %v2126_v34, %s2022_s3 }
 0x220   :  { %366 = vrot.lane.b32.xlu0 %v2124_v32, %s2022_s3 }
 0x286   :  { %v1914_v36 = vpop.permute.xlu0 %1913 }
 0x287   :  { %v1916_v37 = vunpack.i.h.bf16 %v1914_v36  ;;  %v1915_v38 = vunpack.i.l.bf16 %v1914_v36 }
 0x289   :  { %v1812_v40 = vpack.c.bf16 %v1916_v37, %v1915_v38 }
 0x28a   :  { %v1924_v61 = vpop.permute.xlu0 %1923 }
 0x28b   :  { %1814 = vmatprep.subr.msk.bf16.mxu1 %vm2140_vm2, %v1812_v40  ;;  %v1926_v63 = vunpack.i.h.bf16 %v1924_v61  ;;  %v1925_v2 = vunpack.i.l.bf16 %v1924_v61 }
 0x28c   :  { %1817 = vmatpush3.bf16.xpose.msk.msra.mxu1 %vm2140_vm2, %v1812_v40 }
 0x28d   :  { %v1822_v6 = vpack.c.bf16 %v1926_v63, %v1925_v2 }
 0x28e   :  { %v365_v11 = vpop.permute.xlu0 %364 }
 0x292   :  { %v367_v12 = vpop.permute.xlu0 %366 }
 0x293   :  { %1687 = vmatmul.mubr.msk.f32.vlgmr.msra.gmra.mrb[2].mxu1 %vm170_vm1, %v2124_v32 }
 0x366   :  { %v1688_v42 = vpop.f32.mrb[2].mxu1 }
 0x367   :  { %v245_v44 = vpop.f32.mrb[3].mxu1  ;;  %v251_v46 = vadd.f32 %v1688_v42, %v2158_v43 }
 0x368   :  { %v246_v45 = vadd.f32 %v245_v44, %v2153_v41 }
 0x369   :  { %v258_v48 = vsel %vm254_vm3, %v251_v46, -inf }
 0x36a   :  { %v255_v47 = vsel %vm254_vm3, %v246_v45, -inf }
 0x36b   :  { %256 = vmax.xlane.f32.xlu1 %v255_v47 }
 0x36f   :  { %259 = vmax.xlane.f32.xlu1 %v258_v48 }
 0x3f8   :  { %v257_v49 = vpop.xlane.xlu1 %256 }
 0x3f9   :  { %v261_v50 = vsub.f32 %v246_v45, %v257_v49 }
 0x3fb   :  { %v263_v53 = vmul.f32 1.442695, %v261_v50 }
 0x3fc   :  { %v260_v51 = vpop.xlane.xlu1 %259 }
 0x3fd   :  { %v262_v52 = vsub.f32 %v251_v46, %v260_v51 }
 0x3ff   :  { %v265_v54 = vmul.f32 1.442695, %v262_v52 }
 0x401   :  { %1956 = vpow2.f32 %v265_v54 }
 0x402   :  { %1958 = vpow2.f32 %v263_v53 }
 0x40b   :  { %v1957_v55 = vpop.eup %1956 }
 0x40c   :  { %v270_v56 = vsel %vm254_vm3, %v1957_v55, 0.0  ;;  %v1959_v57 = vpop.eup %1958 }
 0x40d   :  { %271 = vadd.xlane.f32.xlu1 %v270_v56  ;;  %v267_v58 = vsel %vm254_vm3, %v1959_v57, 0.0 }
 0x411   :  { %268 = vadd.xlane.f32.xlu1 %v267_v58  ;;  %v160_v58 = vld [vmem:[%s2351_s4] sm:$0xff] }
 0x422   :  { %1918 = vrot.lane.b32.xlu1 %v2132_v35, %s2023_s1 }
 0x49a   :  { %v272_v59 = vpop.xlane.xlu1 %271 }
 0x49b   :  { %1960 = vrcp.f32 %v272_v59 }
 0x49e   :  { %v269_v60 = vpop.xlane.xlu1 %268 }
 0x49f   :  { %1962 = vrcp.f32 %v269_v60 }
 0x4a2   :  { %v1919_v62 = vpop.permute.xlu1 %1918 }
 0x4a3   :  { %v1921_v3 = vunpack.i.h.bf16 %v1919_v62  ;;  %v1920_v4 = vunpack.i.l.bf16 %v1919_v62 }
 0x4a5   :  { %v1818_v5 = vpack.c.bf16 %v1921_v3, %v1920_v4  ;;  %v1961_v7 = vpop.eup %1960 }
 0x4a6   :  { %v276_v10 = vmul.f32 %v1961_v7, %v1957_v55 }
 0x4a7   :  { %1819 = vmatprep.subr.bf16.mxu1 %v1818_v5 }
 0x4a8   :  { %1821 = vmatpush3.bf16.msra.mxu1 %v1818_v5 }
 0x4a9   :  { %v1963_v8 = vpop.eup %1962  ;;  %1824 = vmatprep.subr.msk.bf16.mxu1 %vm2140_vm2, %v1822_v6 }
 0x4aa   :  { %v275_v9 = vmul.f32 %v1963_v8, %v1959_v57  ;;  %v161_v57 = vld [vmem:[%s2351_s4 + $0x8] sm:$0xff] }
 0x4ab   :  { %1710 = vmatprep.subr.mxu0 %v161_v57 }
 0x4ac   :  { %1693 = vmatprep.mubr.msk.f32.mxu1 %vm254_vm3, %v275_v9  ;;  %1711 = vmatpush3.msra.mxu0 %v161_v57 }
 0x4ad   :  { %1694 = vmatmul.mubr.msk.f32.vlgmr.msra.gmra.mrb[4].mxu1 %vm254_vm3, %v276_v10  ;;  %1715 = vmatprep.subr.mxu0 %v160_v58 }
 0x4ae   :  { %1700 = vmatprep.mubr.msk.f32.mxu1 %vm170_vm1, %v365_v11 }
 0x4b1   :  { %1827 = vmatpush3.bf16.xpose.msk.msra.mxu1 %vm2140_vm2, %v1822_v6 }
 0x4b8   :  { %1701 = vmatmul.mubr.msk.f32.vlgmr.msra.gmra.mrb[6].mxu1 %vm170_vm1, %v367_v12 }
 0x580   :  { %v2175_v13 = vpop.f32.mrb[4].mxu1 }
 0x581   :  { %v2177_v14 = vpop.f32.mrb[5].mxu1 }
 0x58b   :  { %v1702_v15 = vpop.f32.mrb[6].mxu1 }
 0x58c   :  { %v452_v16 = vadd.f32 %v1702_v15, %v2158_v43  ;;  %v446_v17 = vpop.f32.mrb[7].mxu1 }
 0x58d   :  { %v447_v18 = vadd.f32 %v446_v17, %v2153_v41 }
 0x58e   :  { %v458_v19 = vsel %vm254_vm3, %v452_v16, -inf }
 0x58f   :  { %459 = vmax.xlane.f32.xlu0 %v458_v19  ;;  %v455_v20 = vsel %vm254_vm3, %v447_v18, -inf }
 0x590   :  { %456 = vmax.xlane.f32.xlu1 %v455_v20 }
 0x5a1   :  { %1928 = vrot.lane.b32.xlu1 %v2132_v35, %s2024_s11 }
 0x5a5   :  { %726 = vrot.lane.b32.xlu1 %v2126_v34, %s2025_s12 }
 0x5a9   :  { %728 = vrot.lane.b32.xlu1 %v2124_v32, %s2025_s12 }
 0x5ad   :  { %1938 = vrot.lane.b32.xlu1 %v2132_v35, %s2026_s13 }
 0x5b1   :  { %1011 = vrot.lane.b32.xlu1 %v2124_v32, %s2027_s14 }
 0x61c   :  { %v460_v21 = vpop.xlane.xlu0 %459 }
 0x61d   :  { %v462_v22 = vsub.f32 %v452_v16, %v460_v21  ;;  %v457_v23 = vpop.xlane.xlu1 %456 }
 0x61e   :  { %v461_v24 = vsub.f32 %v447_v18, %v457_v23 }
 0x61f   :  { %v465_v25 = vmul.f32 1.442695, %v462_v22 }
 0x620   :  { %v463_v26 = vmul.f32 1.442695, %v461_v24 }
 0x621   :  { %1964 = vpow2.f32 %v465_v25  ;;  %v1929_v27 = vpop.permute.xlu1 %1928 }
 0x622   :  { %v1931_v28 = vunpack.i.h.bf16 %v1929_v27  ;;  %v1930_v29 = vunpack.i.l.bf16 %v1929_v27  ;;  %1966 = vpow2.f32 %v463_v26 }
 0x624   :  { %v1828_v30 = vpack.c.bf16 %v1931_v28, %v1930_v29 }
 0x625   :  { %v727_v37 = vpop.permute.xlu1 %726 }
 0x626   :  { %1829 = vmatprep.subr.bf16.mxu1 %v1828_v30 }
 0x627   :  { %1831 = vmatpush3.bf16.msra.mxu1 %v1828_v30 }
 0x629   :  { %v729_v42 = vpop.permute.xlu1 %728 }
 0x62b   :  { %v1965_v31 = vpop.eup %1964 }
 0x62c   :  { %v470_v33 = vsel %vm254_vm3, %v1965_v31, 0.0  ;;  %v1967_v36 = vpop.eup %1966 }
 0x62d   :  { %471 = vadd.xlane.f32.xlu0 %v470_v33  ;;  %v467_v32 = vsel %vm254_vm3, %v1967_v36, 0.0  ;;  %v1939_v48 = vpop.permute.xlu1 %1938 }
 0x62e   :  { %v1941_v51 = vunpack.i.h.bf16 %v1939_v48  ;;  %v1940_v52 = vunpack.i.l.bf16 %v1939_v48 }
 0x630   :  { %v1842_v54 = vpack.c.bf16 %v1941_v51, %v1940_v52 }
 0x631   :  { %468 = vadd.xlane.f32.xlu0 %v467_v32  ;;  %v1012_v56 = vpop.permute.xlu1 %1011  ;;  %v162_v32 = vld [vmem:[%s2351_s4 + $0x10] sm:$0xff] }
 0x647   :  { %1933 = vrot.lane.b32.xlu0 %v2132_v35, %s2028_s15 }
 0x64b   :  { %1009 = vrot.lane.b32.xlu0 %v2126_v34, %s2027_s14 }
 0x6ba   :  { %v472_v38 = vpop.xlane.xlu0 %471 }
 0x6bb   :  { %1968 = vrcp.f32 %v472_v38 }
 0x6be   :  { %v469_v40 = vpop.xlane.xlu0 %468 }
 0x6bf   :  { %1970 = vrcp.f32 %v469_v40 }
 0x6c2   :  { %v1934_v44 = vpop.permute.xlu0 %1933 }
 0x6c3   :  { %v1936_v45 = vunpack.i.h.bf16 %v1934_v44  ;;  %v1935_v46 = vunpack.i.l.bf16 %v1934_v44 }
 0x6c5   :  { %v1832_v47 = vpack.c.bf16 %v1936_v45, %v1935_v46  ;;  %v1969_v49 = vpop.eup %1968 }
 0x6c6   :  { %v476_v34 = vmul.f32 %v1969_v49, %v1965_v31  ;;  %v1010_v55 = vpop.permute.xlu0 %1009 }
 0x6c7   :  { %1834 = vmatprep.subr.msk.bf16.mxu1 %vm2140_vm2, %v1832_v47 }
 0x6c9   :  { %v1971_v50 = vpop.eup %1970 }
 0x6ca   :  { %v475_v53 = vmul.f32 %v1971_v50, %v1967_v36 }
 0x6cc   :  { %1707 = vmatprep.mubr.msk.f32.mxu1 %vm254_vm3, %v475_v53 }
 0x6cd   :  { %1708 = vmatmul.mubr.msk.f32.vlgmr.msra.gmra.mrb[8].mxu1 %vm254_vm3, %v476_v34  ;;  %v163_v34 = vld [vmem:[%s2351_s4 + $0x18] sm:$0xff] }
 0x6ce   :  { %1837 = vmatpush3.bf16.xpose.msk.msra.mxu1 %vm2140_vm2, %v1832_v47  ;;  %1724 = vmatprep.mubr.msk.f32.mxu1 %vm170_vm1, %v727_v37 }
 0x6cf   :  { %1844 = vmatprep.subr.msk.bf16.mxu1 %vm2140_vm2, %v1842_v54 }
 0x6d5   :  { %1725 = vmatmul.mubr.msk.f32.vlgmr.msra.gmra.mrb[10].mxu1 %vm170_vm1, %v729_v42 }
 0x6d6   :  { %1847 = vmatpush3.bf16.xpose.msk.msra.mxu1 %vm2140_vm2, %v1842_v54  ;;  %1743 = vmatprep.mubr.msk.f32.mxu1 %vm170_vm1, %v1010_v55 }
 0x6dd   :  { %1744 = vmatmul.mubr.msk.f32.vlgmr.msra.gmra.mrb[12].mxu1 %vm170_vm1, %v1012_v56 }
 0x7a0   :  { %v1709_v59 = vpop.f32.mrb[8].mxu1 }
 0x7a1   :  { %v555_v60 = vpop.f32.mrb[9].mxu1 }
 0x7a2   :  { %1712 = vmatprep.mubr.msk.f32.mxu0 %vm170_vm1, %v555_v60 }
 0x7a3   :  { %1713 = vmatmul.mubr.msk.f32.vlgmr.msra.gmra.mrb[0].mxu0 %vm170_vm1, %v1709_v59 }
 0x7a4   :  { %1717 = vmatprep.mubr.msk.f32.mxu0 %vm170_vm1, %v2177_v14  ;;  %1716 = vmatpush3.msra.mxu0 %v160_v58  ;;  %v1592_v58 = vld [vmem:[%s2352_s5] ss:$0 sm:$0xff] }
 0x7a8   :  { %v1726_v39 = vpop.f32.mrb[10].mxu1 }
 0x7a9   :  { %v814_v61 = vadd.f32 %v1726_v39, %v2158_v43  ;;  %v808_v62 = vpop.f32.mrb[11].mxu1 }
 0x7aa   :  { %v809_v63 = vadd.f32 %v808_v62, %v2153_v41 }
 0x7ab   :  { %v820_v2 = vsel %vm254_vm3, %v814_v61, -inf  ;;  %1718 = vmatmul.mubr.msk.f32.vlgmr.msra.gmra.mrb[0].mxu0 %vm170_vm1, %v2175_v13 }
 0x7ac   :  { %821 = vmax.xlane.f32.xlu1 %v820_v2  ;;  %v817_v3 = vsel %vm254_vm3, %v809_v63, -inf }
 0x7ad   :  { %818 = vmax.xlane.f32.xlu0 %v817_v3 }
 0x7b0   :  { %v1745_v4 = vpop.f32.mrb[12].mxu1 }
 0x7b1   :  { %v1091_v5 = vpop.f32.mrb[13].mxu1  ;;  %v1097_v7 = vadd.f32 %v1745_v4, %v2158_v43 }
 0x7b2   :  { %v1092_v6 = vadd.f32 %v1091_v5, %v2153_v41 }
 0x7b3   :  { %v1103_v9 = vsel %vm254_vm3, %v1097_v7, -inf }
 0x7b4   :  { %v1100_v8 = vsel %vm254_vm3, %v1092_v6, -inf }
 0x7b5   :  { %1101 = vmax.xlane.f32.xlu1 %v1100_v8 }
 0x7b9   :  { %1104 = vmax.xlane.f32.xlu1 %v1103_v9 }
 0x839   :  { %v822_v10 = vpop.xlane.xlu1 %821 }
 0x83a   :  { %v824_v11 = vsub.f32 %v814_v61, %v822_v10  ;;  %v819_v12 = vpop.xlane.xlu0 %818 }
 0x83b   :  { %v823_v13 = vsub.f32 %v809_v63, %v819_v12  ;;  %v1330_v12 = vld [vmem:[%s2353_s6 + $0x8] sm:$0xff] }
 0x83c   :  { %v827_v14 = vmul.f32 1.442695, %v824_v11  ;;  %v1329_v11 = vld [vmem:[%s2353_s6] sm:$0xff] }
 0x83d   :  { %v825_v15 = vmul.f32 1.442695, %v823_v13  ;;  %v1852_v13 = vpack.c.bf16 %v1330_v12, %v1329_v11  ;;  %v1596_v12 = vld [vmem:[%s2356_s9] ss:$0 sm:$0xff] }
 0x83e   :  { %1972 = vpow2.f32 %v827_v14  ;;  %v1331_v14 = vld [vmem:[%s2353_s6 + $0x10] sm:$0xff] }
 0x83f   :  { %1974 = vpow2.f32 %v825_v15  ;;  %1853 = vmatprep.subr.bf16.mxu1 %v1852_v13  ;;  %v1332_v15 = vld [vmem:[%s2353_s6 + $0x18] sm:$0xff] }
 0x840   :  { %1855 = vmatpush3.bf16.msra.mxu1 %v1852_v13 }
 0x842   :  { %v1102_v16 = vpop.xlane.xlu1 %1101 }
 0x843   :  { %v1106_v17 = vsub.f32 %v1092_v6, %v1102_v16  ;;  %v1856_v16 = vpack.c.bf16 %v1332_v15, %v1331_v14 }
 0x845   :  { %v1108_v43 = vmul.f32 1.442695, %v1106_v17  ;;  %1857 = vmatprep.subr.bf16.mxu1 %v1856_v16  ;;  %v1439_v17 = vld [vmem:[%s2355_s8] sm:$0xff] }
 0x846   :  { %v1105_v18 = vpop.xlane.xlu1 %1104  ;;  %1859 = vmatpush3.bf16.msra.mxu1 %v1856_v16 }
 0x847   :  { %v1107_v41 = vsub.f32 %v1097_v7, %v1105_v18  ;;  %v1440_v18 = vld [vmem:[%s2355_s8 + $0x8] sm:$0xff] }
 0x848   :  { %v1973_v19 = vpop.eup %1972 }
 0x849   :  { %v1110_v20 = vmul.f32 1.442695, %v1107_v41  ;;  %v832_v21 = vsel %vm254_vm3, %v1973_v19, 0.0  ;;  %v1975_v22 = vpop.eup %1974  ;;  %v1860_v41 = vpack.c.bf16 %v1440_v18, %v1439_v17 }
 0x84a   :  { %833 = vadd.xlane.f32.xlu0 %v832_v21  ;;  %v829_v23 = vsel %vm254_vm3, %v1975_v22, 0.0 }
 0x84b   :  { %1976 = vpow2.f32 %v1110_v20 }
 0x84c   :  { %1978 = vpow2.f32 %v1108_v43 }
 0x84e   :  { %830 = vadd.xlane.f32.xlu0 %v829_v23 }
 0x855   :  { %v1977_v24 = vpop.eup %1976 }
 0x856   :  { %v1115_v25 = vsel %vm254_vm3, %v1977_v24, 0.0  ;;  %v1979_v26 = vpop.eup %1978 }
 0x857   :  { %1116 = vadd.xlane.f32.xlu1 %v1115_v25  ;;  %v1112_v27 = vsel %vm254_vm3, %v1979_v26, 0.0 }
 0x85b   :  { %1113 = vadd.xlane.f32.xlu1 %v1112_v27 }
 0x864   :  { %1943 = vrot.lane.b32.xlu0 %v2132_v35, %s2029_s19 }
 0x86c   :  { %1948 = vrot.lane.b32.xlu1 %v2132_v35, %s2030_s20 }
 0x8d7   :  { %v834_v28 = vpop.xlane.xlu0 %833 }
 0x8d8   :  { %1980 = vrcp.f32 %v834_v28  ;;  %v1441_v28 = vld [vmem:[%s2355_s8 + $0x10] sm:$0xff] }
 0x8db   :  { %v831_v29 = vpop.xlane.xlu0 %830 }
 0x8dc   :  { %1982 = vrcp.f32 %v831_v29  ;;  %v1442_v29 = vld [vmem:[%s2355_s8 + $0x18] sm:$0xff] }
 0x8df   :  { %v1944_v30 = vpop.permute.xlu0 %1943 }
 0x8e0   :  { %v1946_v31 = vunpack.i.h.bf16 %v1944_v30  ;;  %v1945_v33 = vunpack.i.l.bf16 %v1944_v30  ;;  %v1864_v30 = vpack.c.bf16 %v1442_v29, %v1441_v28 }
 0x8e2   :  { %v1838_v36 = vpack.c.bf16 %v1946_v31, %v1945_v33  ;;  %v1981_v38 = vpop.eup %1980  ;;  %v1443_v31 = vld [vmem:[%s2355_s8 + $0x20] sm:$0xff]  ;;  %v1444_v33 = vld [vmem:[%s2355_s8 + $0x28] sm:$0xff] }
 0x8e3   :  { %v838_v35 = vmul.f32 %v1981_v38, %v1973_v19 }
 0x8e4   :  { %v1117_v37 = vpop.xlane.xlu1 %1116  ;;  %1839 = vmatprep.subr.bf16.mxu0 %v1838_v36 }
 0x8e5   :  { %1841 = vmatpush3.bf16.msra.mxu0 %v1838_v36  ;;  %v1868_v36 = vpack.c.bf16 %v1444_v33, %v1443_v31 }
 0x8e6   :  { %v1983_v40 = vpop.eup %1982  ;;  %1734 = vmatprep.subr.mxu0 %v162_v32 }
 0x8e7   :  { %v837_v42 = vmul.f32 %v1983_v40, %v1975_v22  ;;  %v1447_v40 = vld [vmem:[%s2355_s8 + $0x40] sm:$0xff] }
 0x8e8   :  { %v1114_v44 = vpop.xlane.xlu1 %1113 }
 0x8e9   :  { %1731 = vmatprep.mubr.msk.f32.mxu0 %vm254_vm3, %v837_v42  ;;  %1984 = vrcp.f32 %v1114_v44  ;;  %v1448_v42 = vld [vmem:[%s2355_s8 + $0x48] sm:$0xff]  ;;  %v1449_v44 = vld [vmem:[%s2355_s8 + $0x50] sm:$0xff] }
 0x8ea   :  { %1732 = vmatmul.mubr.msk.f32.vlgmr.msra.gmra.mrb[2].mxu0 %vm254_vm3, %v838_v35  ;;  %1986 = vrcp.f32 %v1117_v37  ;;  %v1446_v37 = vld [vmem:[%s2355_s8 + $0x38] sm:$0xff]  ;;  %v1876_v35 = vpack.c.bf16 %v1448_v42, %v1447_v40 }
 0x8eb   :  { %1735 = vmatpush3.msra.mxu0 %v162_v32  ;;  %v1445_v32 = vld [vmem:[%s2355_s8 + $0x30] sm:$0xff] }
 0x8ec   :  { %v1949_v45 = vpop.permute.xlu1 %1948  ;;  %v1872_v38 = vpack.c.bf16 %v1446_v37, %v1445_v32 }
 0x8ed   :  { %v1951_v46 = vunpack.i.h.bf16 %v1949_v45  ;;  %v1950_v47 = vunpack.i.l.bf16 %v1949_v45  ;;  %v1450_v45 = vld [vmem:[%s2355_s8 + $0x58] sm:$0xff] }
 0x8ef   :  { %v1848_v48 = vpack.c.bf16 %v1951_v46, %v1950_v47  ;;  %v1880_v46 = vpack.c.bf16 %v1450_v45, %v1449_v44  ;;  %v1451_v47 = vld [vmem:[%s2355_s8 + $0x60] sm:$0xff] }
 0x8f1   :  { %1849 = vmatprep.subr.bf16.mxu0 %v1848_v48 }
 0x8f3   :  { %v1985_v49 = vpop.eup %1984 }
 0x8f4   :  { %v1987_v52 = vpop.eup %1986  ;;  %v1120_v53 = vmul.f32 %v1985_v49, %v1979_v26 }
 0x8f5   :  { %v1121_v54 = vmul.f32 %v1987_v52, %v1977_v24 }
 0x9bd   :  { %v1733_v50 = vpop.f32.mrb[2].mxu0 }
 0x9be   :  { %v917_v51 = vpop.f32.mrb[3].mxu0 }
 0x9bf   :  { %1736 = vmatprep.mubr.msk.f32.mxu0 %vm170_vm1, %v917_v51  ;;  %v1454_v51 = vld [vmem:[%s2355_s8 + $0x78] sm:$0xff] }
 0x9c0   :  { %1737 = vmatmul.mubr.msk.f32.vlgmr.msra.gmra.mrb[0].mxu0 %vm170_vm1, %v1733_v50  ;;  %v1453_v50 = vld [vmem:[%s2355_s8 + $0x70] sm:$0xff] }
 0x9c1   :  { %1851 = vmatpush3.bf16.msra.mxu0 %v1848_v48  ;;  %1750 = vmatprep.mubr.msk.f32.mxu0 %vm254_vm3, %v1120_v53  ;;  %v1452_v48 = vld [vmem:[%s2355_s8 + $0x68] sm:$0xff]  ;;  %v1888_v52 = vpack.c.bf16 %v1454_v51, %v1453_v50  ;;  %v1593_v53 = vld [vmem:[%s2354_s7] ss:$0 sm:$0xff] }
 0x9c2   :  { %1753 = vmatprep.subr.mxu0 %v163_v34  ;;  %v1884_v49 = vpack.c.bf16 %v1452_v48, %v1451_v47 }
 0x9c4   :  { %1751 = vmatmul.mubr.msk.f32.vlgmr.msra.gmra.mrb[4].mxu0 %vm254_vm3, %v1121_v54 }
 0x9c5   :  { %1754 = vmatpush3.msra.mxu0 %v163_v34 }
 0x9c6   :  { %1861 = vmatprep.subr.bf16.mxu0 %v1860_v41 }
 0xa97   :  { %v1752_v55 = vpop.f32.mrb[4].mxu0 }
 0xa98   :  { %v1200_v56 = vpop.f32.mrb[5].mxu0 }
 0xa99   :  { %1755 = vmatprep.mubr.msk.f32.mxu0 %vm170_vm1, %v1200_v56 }
 0xa9a   :  { %1756 = vmatmul.mubr.msk.f32.vlgmr.msra.gmra.mrb[0].mxu0 %vm170_vm1, %v1752_v55 }
 0xa9b   :  { %1863 = vmatpush3.bf16.msra.mxu0 %v1860_v41 }
 0xa9c   :  { %1865 = vmatprep.subr.bf16.mxu0 %v1864_v30 }
 0xa9f   :  { %1867 = vmatpush3.bf16.msra.mxu0 %v1864_v30 }
 0xaa0   :  { %1869 = vmatprep.subr.bf16.mxu0 %v1868_v36 }
 0xaa3   :  { %1871 = vmatpush3.bf16.msra.mxu0 %v1868_v36 }
 0xaa4   :  { %1873 = vmatprep.subr.bf16.mxu0 %v1872_v38 }
 0xaa7   :  { %1875 = vmatpush3.bf16.msra.mxu0 %v1872_v38 }
 0xaa8   :  { %1877 = vmatprep.subr.bf16.mxu0 %v1876_v35 }
 0xaab   :  { %1879 = vmatpush3.bf16.msra.mxu0 %v1876_v35 }
 0xaac   :  { %1881 = vmatprep.subr.bf16.mxu0 %v1880_v46 }
 0xaaf   :  { %1883 = vmatpush3.bf16.msra.mxu0 %v1880_v46 }
 0xab0   :  { %1885 = vmatprep.subr.bf16.mxu0 %v1884_v49 }
 0xab3   :  { %1887 = vmatpush3.bf16.msra.mxu0 %v1884_v49 }
 0xab4   :  { %1889 = vmatprep.subr.bf16.mxu0 %v1888_v52 }
 0xab7   :  { %1891 = vmatpush3.bf16.msra.mxu0 %v1888_v52 }
 0xb6d   :  { %v1757_v57 = vpop.f32.mrb[0].mxu0 }
 0xb6e   :  { %v1293_v59 = vadd.f32 %v1757_v57, %v2097_v1  ;;  %v1281_v60 = vpop.f32.mrb[1].mxu0 }
 0xb6f   :  { %v1292_v39 = vadd.f32 %v1281_v60, %v2092_v0 }
 0xb70   :  { %v2251_v61 = vadd.f32 %v1592_v58, %v1293_v59 }
 0xb71   :  { %v2253_v62 = vadd.f32 %v1592_v58, %v1292_v39 }
 0xb72   :  { %v1306_v63 = vsel %vm40_vm0, %v2251_v61, 0.0 }
 0xb73   :  { %1307 = vadd.xlane.f32.xlu1 %v1306_v63  ;;  %v1303_v2 = vsel %vm40_vm0, %v2253_v62, 0.0 }
 0xb74   :  { %1304 = vadd.xlane.f32.xlu0 %v1303_v2 }
 0xc00   :  { %v1308_v3 = vpop.xlane.xlu1 %1307 }
 0xc01   :  { %v1310_v4 = vmul.f32 0.03125, %v1308_v3  ;;  %v1305_v5 = vpop.xlane.xlu0 %1304 }
 0xc02   :  { %v1309_v6 = vmul.f32 0.03125, %v1305_v5 }
 0xc03   :  { %v1312_v1 = vsub.f32 %v2251_v61, %v1310_v4 }
 0xc04   :  { %v1311_v0 = vsub.f32 %v2253_v62, %v1309_v6 }
 0xc05   :  { %v1314_v9 = vmul.f32 %v1312_v1, %v1312_v1 }
 0xc06   :  { %v1313_v7 = vmul.f32 %v1311_v0, %v1311_v0 }
 0xc07   :  { %v1318_v10 = vsel %vm40_vm0, %v1314_v9, 0.0 }
 0xc08   :  { %v1315_v8 = vsel %vm40_vm0, %v1313_v7, 0.0 }
 0xc09   :  { %1316 = vadd.xlane.f32.xlu0 %v1315_v8 }
 0xc0d   :  { %1319 = vadd.xlane.f32.xlu0 %v1318_v10 }
 0xc96   :  { %v1317_v19 = vpop.xlane.xlu0 %1316 }
 0xc97   :  { %v1321_v43 = vmul.f32 0.03125, %v1317_v19 }
 0xc99   :  { %v1323_v20 = vadd.f32 1e-05, %v1321_v43 }
 0xc9a   :  { %v1320_v21 = vpop.xlane.xlu0 %1319 }
 0xc9b   :  { %1988 = vrsqrt.f32 %v1323_v20  ;;  %v1322_v22 = vmul.f32 0.03125, %v1320_v21 }
 0xc9d   :  { %v1324_v23 = vadd.f32 1e-05, %v1322_v22 }
 0xc9f   :  { %1990 = vrsqrt.f32 %v1324_v23 }
 0xca5   :  { %v1989_v24 = vpop.eup %1988 }
 0xca6   :  { %v1327_v25 = vmul.f32 %v1989_v24, %v1311_v0 }
 0xca8   :  { %1766 = vmatprep.mubr.msk.f32.mxu1 %vm40_vm0, %v1327_v25 }
 0xca9   :  { %v1991_v26 = vpop.eup %1990 }
 0xcaa   :  { %v1328_v27 = vmul.f32 %v1991_v26, %v1312_v1 }
 0xcac   :  { %1767 = vmatmul.mubr.msk.f32.vlgmr.msra.gmra.mrb[14].mxu1 %vm40_vm0, %v1328_v27 }
 0xd7f   :  { %v1768_v34 = vpop.f32.mrb[14].mxu1 }
 0xd80   :  { %v1418_v54 = vadd.f32 %v1768_v34, %v1593_v53  ;;  %v1412_v55 = vpop.f32.mrb[15].mxu1 }
 0xd81   :  { %v1413_v56 = vadd.f32 %v1593_v53, %v1412_v55 }
 0xd82   :  { %v1424_v57 = vmul.f32 0.044715, %v1418_v54  ;;  %v1422_v9 = vmul.f32 0.5, %v1418_v54 }
 0xd83   :  { %v1423_v58 = vmul.f32 0.044715, %v1413_v56  ;;  %v1421_v7 = vmul.f32 0.5, %v1413_v56 }
 0xd84   :  { %v1426_v59 = vmul.f32 %v1424_v57, %v1418_v54 }
 0xd85   :  { %v1425_v60 = vmul.f32 %v1423_v58, %v1413_v56 }
 0xd86   :  { %v1428_v39 = vmul.f32 %v1426_v59, %v1418_v54 }
 0xd87   :  { %v1427_v63 = vmul.f32 %v1425_v60, %v1413_v56 }
 0xd88   :  { %v1430_v2 = vadd.f32 %v1428_v39, %v1418_v54 }
 0xd89   :  { %v1429_v3 = vadd.f32 %v1427_v63, %v1413_v56 }
 0xd8a   :  { %v1432_v4 = vmul.f32 0.7978846, %v1430_v2 }
 0xd8b   :  { %v1431_v5 = vmul.f32 0.7978846, %v1429_v3 }
 0xd8c   :  { %1992 = vtanh.f32 %v1432_v4 }
 0xd8d   :  { %1994 = vtanh.f32 %v1431_v5 }
 0xd96   :  { %v1993_v6 = vpop.eup %1992 }
 0xd97   :  { %v1995_v1 = vpop.eup %1994  ;;  %v1436_v0 = vadd.f32 1.0, %v1993_v6 }
 0xd98   :  { %v1435_v8 = vadd.f32 1.0, %v1995_v1 }
 0xd99   :  { %v1438_v11 = vmul.f32 %v1436_v0, %v1422_v9 }
 0xd9a   :  { %v1437_v10 = vmul.f32 %v1435_v8, %v1421_v7 }
 0xd9c   :  { %1801 = vmatprep.mubr.f32.mxu0 %v1437_v10 }
 0xd9d   :  { %1802 = vmatmul.mubr.f32.vlgmr.msra.gmra.mrb[6].mxu0 %v1438_v11 }
 0xe70   :  { %v1803_v13 = vpop.f32.mrb[6].mxu0 }
 0xe71   :  { %v1534_v14 = vadd.f32 %v1803_v13, %v1596_v12  ;;  %v1528_v15 = vpop.f32.mrb[7].mxu0 }
 0xe72   :  { %v1529_v16 = vadd.f32 %v1596_v12, %v1528_v15 }
 0xe73   :  { %v1538_v17 = vadd.f32 %v1534_v14, %v2251_v61 }
 0xe74   :  { %v1537_v18 = vadd.f32 %v1529_v16, %v2253_v62 }
 0xe75   :  { %1540 = vst.msk [vmem:[#allocation2 + $0x8] sm:$0xff] %vm40_vm0, %v1538_v17 }
 0xe76   :  { %1539 = vst.msk [vmem:[#allocation2] sm:$0xff] %vm40_vm0, %v1537_v18 }
 0xe77   :  { %2007 = shalt.err (!%p2004_p4)
}
 0xe78   :  { %s2008_s19 = scalar_lea.hbm %s2357_s10, 256 }
 0xe79   :  { %p2009_p5 = scmp.ne.s32.totalorder %s2357_s10, %s2008_s19  ;;  %p2012_p6 = scmp.lt.u32.totalorder %s2008_s19, %s2357_s10 }
 0xe7b   :  { %p2014_p7 = pnand %p2012_p6, %p2009_p5 }
 0xe7d   :  { %2017 = shalt.err (!%p2014_p7)
}
 0xe7e   :  { %s2032_s2 = smov 128   ;;  %s2033_s24 = smov 8  }
 0xe7f   :  { %1552 = dma.vmem_to_hbm [thread:$0]  %s1547_s0, 256, %s2357_s10, [#allocation3], %s2032_s2, %s2032_s2, %s2033_s24  }
 0xe80   :  { %2018 = dma.done.wait [#allocation3], 256  }
 0xe81   :  { %2019 = vsyncadd [#allocation3], 4294967040 }
 0xe82   :  { %1556 = vsyncpa [#allocation3], 1 }

</bundles_post_ra>
